<compile_context>
chip_gen: v5e
topology: v5e:2x2
jax: 0.10.0
libtpu: 0.0.40
codegen_flags: <defaults>
</compile_context>

<pallas_src>
import jax
import jax.numpy as jnp
from jax.experimental import pallas as pl
from jax.experimental.pallas import tpu as pltpu

PLANET_MAX_NUM = 28
PER_PLANET_FEATURES = 7
FIRST_LAYER_SIZE = 12
SECOND_LAYER_SIZE = 6
IN_FEATURES = PLANET_MAX_NUM * PER_PLANET_FEATURES  # 196

# Rows of x per grid step.  4096 rows of f32 x is ~3.1 MiB (double-buffered ~6.2 MiB);
# with the lane-padded intermediates the whole step stays well under the 32 MiB default
# scoped VMEM while amortizing the ~0.35 us fixed per-step overhead (HBM-bound kernel).
DEFAULT_BATCH_TILE = 4096


def _mlp_softmax_kernel(x_ref, w1_ref, b1_ref, w2_ref, b2_ref, w3_ref, b3_ref,
                        o_ref):
    """One batch tile of the fused MLP + softmax forward pass."""
    # x goes straight to the MXU in its stored dtype (f32 or bf16); no VPU cast.
    x = x_ref[...]

    # first_layer(x).clamp(min=0)
    h1 = jnp.dot(x, w1_ref[...], preferred_element_type=jnp.float32) + b1_ref[...]
    h1 = jnp.maximum(h1, 0.0)

    # second_layer(h1).clamp(min=0)
    h2 = jnp.dot(h1, w2_ref[...], preferred_element_type=jnp.float32) + b2_ref[...]
    h2 = jnp.maximum(h2, 0.0)

    # predictions(h2)
    logits = jnp.dot(h2, w3_ref[...], preferred_element_type=jnp.float32) + b3_ref[...]

    # Numerically-stable softmax over the planet axis.  Exact division so every row
    # sums to 1 to float32 rounding (approx reciprocal was not accurate enough).
    m = jnp.max(logits, axis=-1, keepdims=True)
    e = jnp.exp(logits - m)
    s = jnp.sum(e, axis=-1, keepdims=True)
    o_ref[...] = (e / s).astype(o_ref.dtype)


def two_layer_network_forward(x, params, *, batch_tile=DEFAULT_BATCH_TILE):
    """x: [B, 196] float32 or bfloat16 -> softmax probs [B, 28] float32."""
    w1, b1, w2, b2, w3, b3 = params
    B = x.shape[0]

    # First-layer weight matches x's dtype so a bf16 x feeds the MXU as bf16
    # (no in-kernel cast; the big operand's HBM/vreg footprint is halved).
    w1 = w1.astype(x.dtype)

    # Tile size: multiple of 8 sublanes, no larger than needed for the batch.
    tb = min(int(batch_tile), ((B + 7) // 8) * 8)
    tb = max(8, ((tb + 7) // 8) * 8)
    grid = (pl.cdiv(B, tb),)  # ragged last block handled by Pallas (no jnp.pad copy)

    # Weights/biases: full-array blocks with constant index_maps -> fetched once,
    # VMEM-resident across all batch grid steps.
    def resident(a):
        return pl.BlockSpec(a.shape, lambda i: (0,) * a.ndim)

    return pl.pallas_call(
        _mlp_softmax_kernel,
        out_shape=jax.ShapeDtypeStruct((B, PLANET_MAX_NUM), jnp.float32),
        grid=grid,
        in_specs=[
            pl.BlockSpec((tb, IN_FEATURES), lambda i: (i, 0)),  # x: tiled over batch
            resident(w1), resident(b1),
            resident(w2), resident(b2),
            resident(w3), resident(b3),
        ],
        out_specs=pl.BlockSpec((tb, PLANET_MAX_NUM), lambda i: (i, 0)),
        compiler_params=pltpu.CompilerParams(
            dimension_semantics=("parallel",),   # v7x: consider pltpu.CORE_PARALLEL
            vmem_limit_bytes=48 * 1024 * 1024,   # headroom for tb=4096, safe on v7x (64 MiB)
        ),
    )(x, w1, b1, w2, b2, w3, b3)


def init_params(key):
    """Deterministic init mimicking torch.nn.Linear default U(-1/sqrt(fan_in), +1/sqrt(fan_in))."""
    def linear(key, fan_in, fan_out):
        kw, kb = jax.random.split(key)
        bound = 1.0 / jnp.sqrt(float(fan_in))
        w = jax.random.uniform(kw, (fan_in, fan_out), jnp.float32, -bound, bound)
        b = jax.random.uniform(kb, (1, fan_out), jnp.float32, -bound, bound)
        return w, b

    k1, k2, k3 = jax.random.split(key, 3)
    w1, b1 = linear(k1, IN_FEATURES, FIRST_LAYER_SIZE)
    w2, b2 = linear(k2, FIRST_LAYER_SIZE, SECOND_LAYER_SIZE)
    w3, b3 = linear(k3, SECOND_LAYER_SIZE, PLANET_MAX_NUM)
    return (w1, b1, w2, b2, w3, b3)


def reference_forward(x, params):
    w1, b1, w2, b2, w3, b3 = params
    h1 = jnp.maximum(x @ w1 + b1, 0.0)
    h2 = jnp.maximum(h1 @ w2 + b2, 0.0)
    logits = h2 @ w3 + b3
    return jax.nn.softmax(logits, axis=-1)


if __name__ == "__main__":
    key = jax.random.PRNGKey(0)
    kx, kp = jax.random.split(key)
    params = init_params(kp)

    # Small primary check (single tile).
    batch = 8
    x = jax.random.normal(kx, (batch, IN_FEATURES), jnp.float32)
    out = jax.block_until_ready(two_layer_network_forward(x, params))
    ref = reference_forward(x, params)
    assert out.shape == (batch, PLANET_MAX_NUM)
    assert jnp.allclose(out, ref, atol=1e-3, rtol=1e-3)
    # Exact-division softmax: rows sum to 1 to f32 rounding.
    assert jnp.allclose(jnp.sum(out, axis=-1), 1.0, atol=1e-4)

    # Multi-tile + ragged last block path (grid > 1, no wrapper-side pad/slice copies).
    big_b = 300
    xb = jax.random.normal(kx, (big_b, IN_FEATURES), jnp.float32)
    out_b = jax.block_until_ready(
        two_layer_network_forward(xb, params, batch_tile=128))
    assert out_b.shape == (big_b, PLANET_MAX_NUM)
    assert jnp.allclose(out_b, reference_forward(xb, params), atol=1e-3, rtol=1e-3)
    assert jnp.allclose(jnp.sum(out_b, axis=-1), 1.0, atol=1e-4)

    # bf16 fast path: bf16 x (and w1) feed the MXU directly, f32 accumulation.
    x_bf16 = x.astype(jnp.bfloat16)
    out_bf16 = jax.block_until_ready(two_layer_network_forward(x_bf16, params))
    ref_bf16 = reference_forward(x_bf16.astype(jnp.float32), params)
    assert jnp.allclose(out_bf16, ref_bf16, atol=5e-2)

    print("KERNEL_OK")
</pallas_src>

<mosaic_0001>
module attributes {stable_mosaic.version = 11 : i64} {
  func.func @_mlp_softmax_kernel(%arg0: i32, %arg1: memref<8x196xf32, #tpu.memory_space<vmem>>, %arg2: memref<196x12xf32, #tpu.memory_space<vmem>>, %arg3: memref<1x12xf32, #tpu.memory_space<vmem>>, %arg4: memref<12x6xf32, #tpu.memory_space<vmem>>, %arg5: memref<1x6xf32, #tpu.memory_space<vmem>>, %arg6: memref<6x28xf32, #tpu.memory_space<vmem>>, %arg7: memref<1x28xf32, #tpu.memory_space<vmem>>, %arg8: memref<8x28xf32, #tpu.memory_space<vmem>>) attributes {dimension_semantics = [#tpu.dimension_semantics<parallel>], iteration_bounds = array<i64: 1>, scalar_prefetch = 0 : i64, scratch_operands = 0 : i64, tpu.core_type = #tpu.core_type<tc>, window_params = [{transform_indices = @transform_0, window_bounds = array<i64: 8, 196>}, {pipeline_mode = #tpu.pipeline_mode<synchronous>, transform_indices = @transform_1, window_bounds = array<i64: 196, 12>}, {pipeline_mode = #tpu.pipeline_mode<synchronous>, transform_indices = @transform_2, window_bounds = array<i64: 1, 12>}, {pipeline_mode = #tpu.pipeline_mode<synchronous>, transform_indices = @transform_3, window_bounds = array<i64: 12, 6>}, {pipeline_mode = #tpu.pipeline_mode<synchronous>, transform_indices = @transform_4, window_bounds = array<i64: 1, 6>}, {pipeline_mode = #tpu.pipeline_mode<synchronous>, transform_indices = @transform_5, window_bounds = array<i64: 6, 28>}, {pipeline_mode = #tpu.pipeline_mode<synchronous>, transform_indices = @transform_6, window_bounds = array<i64: 1, 28>}, {transform_indices = @transform_7, window_bounds = array<i64: 8, 28>}]} {
    %c0 = arith.constant 0 : index
    %c0_0 = arith.constant 0 : index
    %0 = vector.load %arg1[%c0, %c0_0] : memref<8x196xf32, #tpu.memory_space<vmem>>, vector<8x196xf32>
    %c0_1 = arith.constant 0 : index
    %c0_2 = arith.constant 0 : index
    %1 = vector.load %arg2[%c0_1, %c0_2] : memref<196x12xf32, #tpu.memory_space<vmem>>, vector<196x12xf32>
    %cst = arith.constant dense<0.000000e+00> : vector<8x12xf32>
    %2 = tpu.matmul %0, %1, %cst {dimension_numbers = #tpu.dot_dimension_numbers<[1], [0], [0], [1], [0, 0, 1, 1], [], []>} : vector<8x196xf32>, vector<196x12xf32>, vector<8x12xf32> -> vector<8x12xf32>
    %c0_3 = arith.constant 0 : index
    %c0_4 = arith.constant 0 : index
    %3 = vector.load %arg3[%c0_3, %c0_4] : memref<1x12xf32, #tpu.memory_space<vmem>>, vector<1x12xf32>
    %4 = vector.broadcast %3 : vector<1x12xf32> to vector<8x12xf32>
    %5 = arith.addf %2, %4 : vector<8x12xf32>
    %cst_5 = arith.constant 0.000000e+00 : f32
    %6 = vector.broadcast %cst_5 : f32 to vector<8x12xf32>
    %7 = arith.maximumf %5, %6 : vector<8x12xf32>
    %c0_6 = arith.constant 0 : index
    %c0_7 = arith.constant 0 : index
    %8 = vector.load %arg4[%c0_6, %c0_7] : memref<12x6xf32, #tpu.memory_space<vmem>>, vector<12x6xf32>
    %cst_8 = arith.constant dense<0.000000e+00> : vector<8x6xf32>
    %9 = tpu.matmul %7, %8, %cst_8 {dimension_numbers = #tpu.dot_dimension_numbers<[1], [0], [0], [1], [0, 0, 1, 1], [], []>} : vector<8x12xf32>, vector<12x6xf32>, vector<8x6xf32> -> vector<8x6xf32>
    %c0_9 = arith.constant 0 : index
    %c0_10 = arith.constant 0 : index
    %10 = vector.load %arg5[%c0_9, %c0_10] : memref<1x6xf32, #tpu.memory_space<vmem>>, vector<1x6xf32>
    %11 = vector.broadcast %10 : vector<1x6xf32> to vector<8x6xf32>
    %12 = arith.addf %9, %11 : vector<8x6xf32>
    %cst_11 = arith.constant 0.000000e+00 : f32
    %13 = vector.broadcast %cst_11 : f32 to vector<8x6xf32>
    %14 = arith.maximumf %12, %13 : vector<8x6xf32>
    %c0_12 = arith.constant 0 : index
    %c0_13 = arith.constant 0 : index
    %15 = vector.load %arg6[%c0_12, %c0_13] : memref<6x28xf32, #tpu.memory_space<vmem>>, vector<6x28xf32>
    %cst_14 = arith.constant dense<0.000000e+00> : vector<8x28xf32>
    %16 = tpu.matmul %14, %15, %cst_14 {dimension_numbers = #tpu.dot_dimension_numbers<[1], [0], [0], [1], [0, 0, 1, 1], [], []>} : vector<8x6xf32>, vector<6x28xf32>, vector<8x28xf32> -> vector<8x28xf32>
    %c0_15 = arith.constant 0 : index
    %c0_16 = arith.constant 0 : index
    %17 = vector.load %arg7[%c0_15, %c0_16] : memref<1x28xf32, #tpu.memory_space<vmem>>, vector<1x28xf32>
    %18 = vector.broadcast %17 : vector<1x28xf32> to vector<8x28xf32>
    %19 = arith.addf %16, %18 : vector<8x28xf32>
    %cst_17 = arith.constant dense<0xFF800000> : vector<8xf32>
    %20 = vector.multi_reduction <maximumf>, %19, %cst_17 [1] : vector<8x28xf32> to vector<8xf32>
    %21 = vector.shape_cast %20 : vector<8xf32> to vector<8x1xf32>
    %22 = vector.broadcast %21 : vector<8x1xf32> to vector<8x28xf32>
    %23 = arith.subf %19, %22 : vector<8x28xf32>
    %24 = math.exp %23 : vector<8x28xf32>
    %cst_18 = arith.constant dense<0.000000e+00> : vector<8xf32>
    %25 = vector.multi_reduction <add>, %24, %cst_18 [1] : vector<8x28xf32> to vector<8xf32>
    %26 = vector.shape_cast %25 : vector<8xf32> to vector<8x1xf32>
    %27 = vector.broadcast %26 : vector<8x1xf32> to vector<8x28xf32>
    %28 = arith.divf %24, %27 : vector<8x28xf32>
    %c0_19 = arith.constant 0 : index
    %c0_20 = arith.constant 0 : index
    %29 = vector.load %arg8[%c0_19, %c0_20] : memref<8x28xf32, #tpu.memory_space<vmem>>, vector<8x28xf32>
    tpu.vector_store %arg8[%c0_19, %c0_20], %28 {strides = array<i32>} : memref<8x28xf32, #tpu.memory_space<vmem>>, vector<8x28xf32>,
    return
  }
  func.func @transform_0(%arg0: i32) -> (i32, i32) {
    %c0_i32 = arith.constant 0 : i32
    %c0_i32_0 = arith.constant 0 : i32
    return %arg0, %c0_i32 : i32, i32
  }
  func.func @transform_1(%arg0: i32) -> (i32, i32) {
    %c0_i32 = arith.constant 0 : i32
    %c0_i32_0 = arith.constant 0 : i32
    %c0_i32_1 = arith.constant 0 : i32
    return %c0_i32, %c0_i32_0 : i32, i32
  }
  func.func @transform_2(%arg0: i32) -> (i32, i32) {
    %c0_i32 = arith.constant 0 : i32
    %c0_i32_0 = arith.constant 0 : i32
    %c0_i32_1 = arith.constant 0 : i32
    return %c0_i32, %c0_i32_0 : i32, i32
  }
  func.func @transform_3(%arg0: i32) -> (i32, i32) {
    %c0_i32 = arith.constant 0 : i32
    %c0_i32_0 = arith.constant 0 : i32
    %c0_i32_1 = arith.constant 0 : i32
    return %c0_i32, %c0_i32_0 : i32, i32
  }
  func.func @transform_4(%arg0: i32) -> (i32, i32) {
    %c0_i32 = arith.constant 0 : i32
    %c0_i32_0 = arith.constant 0 : i32
    %c0_i32_1 = arith.constant 0 : i32
    return %c0_i32, %c0_i32_0 : i32, i32
  }
  func.func @transform_5(%arg0: i32) -> (i32, i32) {
    %c0_i32 = arith.constant 0 : i32
    %c0_i32_0 = arith.constant 0 : i32
    %c0_i32_1 = arith.constant 0 : i32
    return %c0_i32, %c0_i32_0 : i32, i32
  }
  func.func @transform_6(%arg0: i32) -> (i32, i32) {
    %c0_i32 = arith.constant 0 : i32
    %c0_i32_0 = arith.constant 0 : i32
    %c0_i32_1 = arith.constant 0 : i32
    return %c0_i32, %c0_i32_0 : i32, i32
  }
  func.func @transform_7(%arg0: i32) -> (i32, i32) {
    %c0_i32 = arith.constant 0 : i32
    %c0_i32_0 = arith.constant 0 : i32
    return %arg0, %c0_i32 : i32, i32
  }
}

</mosaic_0001>

<bundles_post_ra>
// kernel: tpu_custom_call.1
= control target key start
LH: loop header
LB: loop body
LE: loop exit
PB: predicated region body
PF: predicated region fallthrough
CT: control target
= control target key end

     0   :  { %vm62_vm0 = vcmask 1043456   ;;  %s404_s0 = inlined_call_operand.vmem [shape: f32[8,196], index: 0, kind: input, shape index: {}]   ;;  %s405_s1 = inlined_call_operand.vmem [shape: f32[196,12], index: 1, kind: input, shape index: {}]   ;;  %s406_s2 = inlined_call_operand.vmem [shape: f32[1,12], index: 2, kind: input, shape index: {}]   ;;  %s407_s3 = inlined_call_operand.vmem [shape: f32[12,6], index: 3, kind: input, shape index: {}]   ;;  %s408_s4 = inlined_call_operand.vmem [shape: f32[1,6], index: 4, kind: input, shape index: {}]   ;;  %s409_s5 = inlined_call_operand.vmem [shape: f32[6,28], index: 5, kind: input, shape index: {}]   ;;  %s410_s6 = inlined_call_operand.vmem [shape: f32[1,28], index: 6, kind: input, shape index: {}]   ;;  %s411_s7 = inlined_call_operand.hbm [shape: f32[8,28], index: 7, kind: output, shape index: {}]  }
   0x1   :  { %v44_v0 = vld [vmem:[%s405_s1 + $0x78] sm:$0xff]  ;;  %v43_v1 = vld [vmem:[%s405_s1 + $0x70] sm:$0xff]  ;;  %v42_v2 = vld [vmem:[%s405_s1 + $0x68] sm:$0xff] }
   0x2   :  { %66 = vmatpush.msra.mxu0 %v44_v0  ;;  %v53_v3 = vld [vmem:[%s405_s1 + $0xc0] sm:$0xf]  ;;  %v52_v4 = vld [vmem:[%s405_s1 + $0xb8] sm:$0xff]  ;;  %v51_v6 = vld [vmem:[%s405_s1 + $0xb0] sm:$0xff] }
   0x3   :  { %v41_v5 = vld [vmem:[%s405_s1 + $0x60] sm:$0xff]  ;;  %216 = vmatpush.msk.msra.mxu1 %vm62_vm0, %v53_v3  ;;  %v40_v7 = vld [vmem:[%s405_s1 + $0x58] sm:$0xff]  ;;  %v50_v8 = vld [vmem:[%s405_s1 + $0xa8] sm:$0xff] }
   0x4   :  { %67 = vmatpush.msra.mxu0 %v43_v1  ;;  %v39_v9 = vld [vmem:[%s405_s1 + $0x50] sm:$0xff]  ;;  %v49_v10 = vld [vmem:[%s405_s1 + $0xa0] sm:$0xff]  ;;  %v38_v11 = vld [vmem:[%s405_s1 + $0x48] sm:$0xff] }
   0x5   :  { %94 = vmatpush.msra.mxu1 %v52_v4 }
   0x6   :  { %68 = vmatpush.msra.mxu0 %v42_v2 }
   0x7   :  { %95 = vmatpush.msra.mxu1 %v51_v6 }
   0x8   :  { %69 = vmatpush.msra.mxu0 %v41_v5 }
   0x9   :  { %96 = vmatpush.msra.mxu1 %v50_v8 }
   0xa   :  { %70 = vmatpush.msra.mxu0 %v40_v7 }
   0xb   :  { %12 = vsyncpa [#allocation3], 0  ;;  %v48_v12 = vld [vmem:[%s405_s1 + $0x98] sm:$0xff]  ;;  %v37_v13 = vld [vmem:[%s405_s1 + $0x40] sm:$0xff]  ;;  %97 = vmatpush.msra.mxu1 %v49_v10  ;;  %vm58_vm1 = vcmask 556032   ;;  %vm113_vm2 = vcmask 97280  }
   0xc   :  { %71 = vmatpush.msra.mxu0 %v39_v9  ;;  %v47_v14 = vld [vmem:[%s405_s1 + $0x90] sm:$0xff]  ;;  %v36_v15 = vld [vmem:[%s405_s1 + $0x38] sm:$0xff]  ;;  %v46_v16 = vld [vmem:[%s405_s1 + $0x88] sm:$0xff]  ;;  %vm150_vm3 = vcmask 1045504   ;;  %vm146_vm4 = vcmask 48128   ;;  %vm174_vm5 = vcmask 228352  }
   0xd   :  { %98 = vmatpush.msra.mxu1 %v48_v12  ;;  %v35_v17 = vld [vmem:[%s405_s1 + $0x30] sm:$0xff]  ;;  %v45_v18 = vld [vmem:[%s405_s1 + $0x80] sm:$0xff]  ;;  %v34_v19 = vld [vmem:[%s405_s1 + $0x28] sm:$0xff]  ;;  %s207_s18 = sshll.u32 %s411_s7, 4  ;;  %s208_s18 = int_to_ptr.hbm [resolvable:$true] %s207_s18 }
   0xe   :  { %72 = vmatpush.msra.mxu0 %v38_v11  ;;  %v28_v20 = vld [vmem:[%s404_s0 + $0x8] sm:$0xff]  ;;  %v33_v21 = vld [vmem:[%s405_s1 + $0x20] sm:$0xff]  ;;  %v32_v22 = vld [vmem:[%s405_s1 + $0x18] sm:$0xff] }
   0xf   :  { %99 = vmatpush.msra.mxu1 %v47_v14  ;;  %v31_v23 = vld [vmem:[%s405_s1 + $0x10] sm:$0xff]  ;;  %v30_v24 = vld [vmem:[%s405_s1 + $0x8] sm:$0xff]  ;;  %v29_v25 = vld [vmem:[%s405_s1] sm:$0xff] }
  0x10   :  { %73 = vmatpush.msra.mxu0 %v37_v13  ;;  %v27_v26 = vld [vmem:[%s404_s0] sm:$0xff]  ;;  %v108_v27 = vld [vmem:[%s407_s3 + $0x8] sm:$0xf] }
  0x11   :  { %100 = vmatpush.msra.mxu1 %v46_v16  ;;  %218 = vmatpush.msk.msra.mxu2 %vm62_vm0, %v108_v27  ;;  %v107_v28 = vld [vmem:[%s407_s3] sm:$0xff] }
  0x12   :  { %74 = vmatpush.msra.mxu0 %v36_v15  ;;  %v223_v29 = vld [vmem:[%s406_s2] ss:$0 sm:$0xff] }
  0x13   :  { %101 = vmatpush.msra.mxu1 %v45_v18  ;;  %135 = vmatpush.msra.mxu2 %v107_v28  ;;  %v141_v35 = vld [vmem:[%s409_s5] sm:$0x3f] }
  0x14   :  { %75 = vmatpush.msra.mxu0 %v35_v17  ;;  %217 = vmatmul.msk.f32.vlgmr.msra.gmra.mxu1 %vm58_vm1, %v28_v20  ;;  %v224_v36 = vld [vmem:[%s408_s4] ss:$0 sm:$0xff]  ;;  %s256_s4 = smov [#allocation2]  }
  0x15   :  { %220 = vmatpush.msk.msra.mxu3 %vm150_vm3, %v141_v35  ;;  %v225_v40 = vld [vmem:[%s410_s6] ss:$0 sm:$0xff]  ;;  %s205_s5 = sshll.u32 %s256_s4, 4  ;;  %s206_s5 = int_to_ptr.vmem [resolvable:$true] %s205_s5 }
  0x16   :  { %76 = vmatpush.msra.mxu0 %v34_v19 }
  0x18   :  { %77 = vmatpush.msra.mxu0 %v33_v21 }
  0x1a   :  { %78 = vmatpush.msra.mxu0 %v32_v22 }
  0x1c   :  { %79 = vmatpush.msra.mxu0 %v31_v23 }
  0x1e   :  { %80 = vmatpush.msra.mxu0 %v30_v24 }
  0x20   :  { %81 = vmatpush.msra.mxu0 %v29_v25 }
  0x21   :  { %82 = vmatmul.f32.vlgmr.msra.gmra.mxu0 %v27_v26 }
  0x91   :  { %v103_v31 = vpop.f32.mrf.mxu1 }
  0x9e   :  { %v83_v30 = vpop.f32.mrf.mxu0 }
  0x9f   :  { %v84_v32 = vadd.f32 %v223_v29, %v83_v30 }
  0xa1   :  { %v104_v33 = vadd.f32 %v103_v31, %v84_v32 }
  0xa3   :  { %v106_v34 = vmax.f32 %v104_v33, 0.0 }
  0xa5   :  { %219 = vmatmul.msk.f32.vlgmr.msra.gmra.mxu2 %vm113_vm2, %v106_v34 }
 0x128   :  { %v137_v37 = vpop.f32.mrf.mxu2 }
 0x129   :  { %v138_v38 = vadd.f32 %v224_v36, %v137_v37 }
 0x12b   :  { %v140_v39 = vmax.f32 %v138_v38, 0.0 }
 0x12d   :  { %221 = vmatmul.msk.f32.vlgmr.msra.gmra.mxu3 %vm146_vm4, %v140_v39 }
 0x1b0   :  { %v171_v41 = vpop.f32.mrf.mxu3 }
 0x1b1   :  { %v172_v42 = vadd.f32 %v225_v40, %v171_v41 }
 0x1b3   :  { %v175_v43 = vsel %vm174_vm5, %v172_v42, -inf }
 0x1b4   :  { %176 = vmax.xlane.f32.xlu0 %v175_v43 }
 0x227   :  { %v177_v44 = vpop.xlane.xlu0 %176 }
 0x228   :  { %v178_v45 = vsub.f32 %v172_v42, %v177_v44 }
 0x22a   :  { %v179_v46 = vmul.f32 1.442695, %v178_v45 }
 0x22c   :  { %226 = vpow2.f32 %v179_v46 }
 0x232   :  { %v227_v47 = vpop.eup %226 }
 0x233   :  { %v181_v48 = vsel %vm174_vm5, %v227_v47, 0.0 }
 0x234   :  { %182 = vadd.xlane.f32.xlu0 %v181_v48 }
 0x2a7   :  { %v183_v49 = vpop.xlane.xlu0 %182 }
 0x2a8   :  { %228 = vrcp.f32 %v183_v49  ;;  %v195_v53 = vand.u32 2147483648, %v183_v49  ;;  %v193_v55 = vand.u32 2147483647, %v183_v49  ;;  %vm189_vm7 = vweird.f32 %v183_v49 }
 0x2aa   :  { %v196_v57 = vor.u32 1.1754944e-38, %v195_v53  ;;  %vm194_vm9 = vcmp.eq.f32.partialorder %v193_v55, 8.507059e+37 }
 0x2ae   :  { %v229_v50 = vpop.eup %228 }
 0x2af   :  { %v185_v51 = vmul.f32 %v229_v50, %v183_v49  ;;  %vm190_vm6 = vweird.f32 %v229_v50 }
 0x2b0   :  { %vm191_vm8 = vmor %vm189_vm7, %vm190_vm6 }
 0x2b1   :  { %v186_v52 = vsub.f32 1.0, %v185_v51 }
 0x2b3   :  { %v187_v54 = vmul.f32 %v229_v50, %v186_v52 }
 0x2b5   :  { %v188_v56 = vadd.f32 %v229_v50, %v187_v54 }
 0x2b7   :  { %v192_v58 = vsel %vm191_vm8, %v229_v50, %v188_v56 }
 0x2b8   :  { %v197_v59 = vsel %vm194_vm9, %v196_v57, %v192_v58 }
 0x2b9   :  { %v198_v60 = vmul.f32 %v227_v47, %v197_v59 }
 0x2bb   :  { %199 = vst.msk [vmem:[#allocation2] sm:$0xff] %vm174_vm5, %v198_v60 }
 0x2bc   :  { %210 = dma.vmem_to_hbm [thread:$0]  %s206_s5, 128, %s208_s18, [#allocation3]  }
 0x2bd   :  { %254 = dma.done.wait [#allocation3], 128  }
 0x2be   :  { %255 = vsyncadd [#allocation3], 4294967168 }
 0x2bf   :  { %215 = vsyncpa [#allocation3], 1 }

</bundles_post_ra>
